<compile_context>
chip_gen: v7x
topology: tpu7x:2x2x1
jax: 0.10.0
libtpu: 0.0.40
codegen_flags: <defaults>
</compile_context>

<pallas_src>
import functools

import jax
import jax.numpy as jnp
from jax import lax
from jax.experimental import pallas as pl
from jax.experimental.pallas import tpu as pltpu


def _round_up(n, m):
    return ((n + m - 1) // m) * m


def _center_loss_kernel(labels_ref, x_ref, centers_ref, out_ref, c_buf,
                        *, batch, tile_b):
    # labels_ref : (b_pad,)      int32 SMEM (scalar-prefetched)
    # x_ref      : (tile_b, D)   f32 VMEM tile of features
    # centers_ref: (C, D)        f32 VMEM-resident class-center table
    # out_ref    : (1, 8, 128)   f32 -- this tile's partial sum broadcast to a vreg
    # c_buf      : (tile_b, D)   f32 scratch holding the gathered centers
    base = pl.program_id(0) * tile_b

    # In-VMEM row gather: c_buf[r] = centers[labels[base + r]].
    # (Padded rows carry label 0 -> always a valid index; masked out below.)
    def gather_row(r, carry):
        cls = labels_ref[base + r]
        c_buf[pl.ds(r, 1), :] = centers_ref[pl.ds(cls, 1), :]
        return carry

    lax.fori_loop(0, tile_b, gather_row, 0, unroll=8)

    diff = x_ref[...] - c_buf[...]                        # (tile_b, D)  VPU
    d = jnp.sum(diff * diff, axis=1, keepdims=True)       # (tile_b, 1)  lane reduce
    d = jnp.clip(d, 1e-12, 1.0e12)                        # clamp(min=1e-12, max=1e12)

    # Mask padded batch rows, then reduce the whole tile to one partial sum.
    row = base + lax.broadcasted_iota(jnp.int32, (tile_b, 1), 0)
    d = jnp.where(row < batch, d, 0.0)
    partial = jnp.sum(d)

    # Lane-dense, unmasked full-vreg store; wrapper reads element [0, 0].
    out_ref[...] = jnp.full((1, 8, 128), partial, dtype=jnp.float32)


def _pick_tile_b(batch, feat_dim, num_classes, vmem_tile_budget=24 * 1024 * 1024):
    # VMEM estimate (f32): 2x double-buffered x tile + c_buf scratch
    # + 2x resident centers  ==  4 * (3 * tile_b * D + 2 * C * D) bytes.
    avail = vmem_tile_budget - 8 * num_classes * feat_dim
    cap = avail // (12 * feat_dim)
    cap = max(8, min(1024, (cap // 8) * 8))
    b8 = _round_up(batch, 8)
    tile_b = min(cap, b8)
    # v7x: once the batch is large, keep >= 2 tiles so both TensorCores work.
    if tile_b == b8 and b8 >= 1024:
        tile_b = _round_up(b8 // 2, 8)
    return tile_b


def center_loss(x, centers, target, *, tile_b=None):
    """x: (B, D), centers: (C, D), target: (B,) int -> scalar f32 loss."""
    x = x.astype(jnp.float32)
    centers = centers.astype(jnp.float32)
    target = target.astype(jnp.int32)

    batch, feat_dim = x.shape
    num_classes, _ = centers.shape

    if tile_b is None:
        tile_b = _pick_tile_b(batch, feat_dim, num_classes)
    tile_b = max(8, _round_up(tile_b, 8))

    b_pad = _round_up(batch, tile_b)
    if b_pad != batch:
        x = jnp.pad(x, ((0, b_pad - batch), (0, 0)))
        target = jnp.pad(target, (0, b_pad - batch))   # pad with class 0 (masked in-kernel)
    num_tiles = b_pad // tile_b

    # TODO(synk): if 2*C*D*4 ever exceeds the VMEM budget (very large class
    # counts), fall back to a double-buffered HBM row gather for the centers.

    kernel = functools.partial(_center_loss_kernel, batch=batch, tile_b=tile_b)

    per_tile = pl.pallas_call(
        kernel,
        out_shape=jax.ShapeDtypeStruct((num_tiles, 8, 128), jnp.float32),
        grid_spec=pltpu.PrefetchScalarGridSpec(
            num_scalar_prefetch=1,                         # labels -> SMEM
            grid=(num_tiles,),
            in_specs=[
                pl.BlockSpec((tile_b, feat_dim), lambda i, lbl: (i, 0)),
                # Whole centers table; constant block index -> fetched once.
                pl.BlockSpec((num_classes, feat_dim), lambda i, lbl: (0, 0)),
            ],
            out_specs=pl.BlockSpec((1, 8, 128), lambda i, lbl: (i, 0, 0)),
            scratch_shapes=[pltpu.VMEM((tile_b, feat_dim), jnp.float32)],
        ),
        compiler_params=pltpu.CompilerParams(
            dimension_semantics=("parallel",),             # tiles are independent
            vmem_limit_bytes=32 * 1024 * 1024,             # > v5e's 16 MiB default
        ),
    )(target, x, centers)

    # clamp-after-mask quirk: each of the (C-1) masked-out entries per row
    # still contributes 1e-12 to the summed loss.
    return jnp.sum(per_tile[:, 0, 0]) / batch + (num_classes - 1) * 1e-12


def center_loss_ref(x, centers, target):
    """Pure-JAX reference mirroring the PyTorch forward exactly."""
    batch = x.shape[0]
    distmat = (
        jnp.sum(x ** 2, axis=1, keepdims=True)
        + jnp.sum(centers ** 2, axis=1, keepdims=True).T
        - 2.0 * x @ centers.T
    )
    classes = jnp.arange(centers.shape[0], dtype=jnp.int32)
    mask = (target[:, None] == classes[None, :]).astype(jnp.float32)
    dist = distmat * mask
    return jnp.sum(jnp.clip(dist, 1e-12, 1.0e12)) / batch


if __name__ == "__main__":
    key = jax.random.PRNGKey(0)

    configs = [
        dict(batch=8, feat_dim=32, num_classes=10, tile_b=None),
        dict(batch=13, feat_dim=40, num_classes=17, tile_b=None),   # batch padding/masking
        dict(batch=300, feat_dim=128, num_classes=50, tile_b=128),  # multi-tile grid path
    ]
    for cfg in configs:
        k_x, k_c, k_t, key = jax.random.split(key, 4)
        x = jax.random.normal(k_x, (cfg["batch"], cfg["feat_dim"]), dtype=jnp.float32)
        # Deterministic synthetic init of the nn.Parameter centers (randn-like).
        centers = jax.random.normal(
            k_c, (cfg["num_classes"], cfg["feat_dim"]), dtype=jnp.float32)
        target = jax.random.randint(
            k_t, (cfg["batch"],), 0, cfg["num_classes"], dtype=jnp.int32)

        loss = jax.block_until_ready(
            center_loss(x, centers, target, tile_b=cfg["tile_b"]))
        loss_ref = jax.block_until_ready(center_loss_ref(x, centers, target))
        assert jnp.allclose(loss, loss_ref, rtol=1e-5, atol=1e-5), (cfg, loss, loss_ref)

    print("KERNEL_OK")
</pallas_src>

<mosaic_0001>
module attributes {stable_mosaic.version = 11 : i64} {
  func.func @_center_loss_kernel(%arg0: i32, %arg1: memref<8xi32, #tpu.memory_space<smem>>, %arg2: memref<8x32xf32, #tpu.memory_space<vmem>>, %arg3: memref<10x32xf32, #tpu.memory_space<vmem>>, %arg4: memref<1x8x128xf32, #tpu.memory_space<vmem>>, %arg5: memref<8x32xf32, #tpu.memory_space<vmem>>) attributes {dimension_semantics = [#tpu.dimension_semantics<parallel>], iteration_bounds = array<i64: 1>, scalar_prefetch = 1 : i64, scratch_operands = 1 : i64, tpu.core_type = #tpu.core_type<tc>, window_params = [{transform_indices = @transform_0, window_bounds = array<i64: 8, 32>}, {pipeline_mode = #tpu.pipeline_mode<synchronous>, transform_indices = @transform_1, window_bounds = array<i64: 10, 32>}, {transform_indices = @transform_2, window_bounds = array<i64: 1, 8, 128>}]} {
    %c8_i32 = arith.constant 8 : i32
    %0 = arith.muli %arg0, %c8_i32 : i32
    %c0_i32 = arith.constant 0 : i32
    %1 = arith.addi %0, %c0_i32 : i32
    %2 = arith.index_cast %1 : i32 to index
    %3 = memref.load %arg1[%2] : memref<8xi32, #tpu.memory_space<smem>>
    %4 = arith.index_cast %3 : i32 to index
    %c0 = arith.constant 0 : index
    %5 = vector.load %arg3[%4, %c0] : memref<10x32xf32, #tpu.memory_space<vmem>>, vector<1x32xf32>
    %6 = arith.index_cast %c0_i32 : i32 to index
    %c0_0 = arith.constant 0 : index
    %7 = vector.load %arg5[%6, %c0_0] : memref<8x32xf32, #tpu.memory_space<vmem>>, vector<1x32xf32>
    tpu.vector_store %arg5[%6, %c0_0], %5 {strides = array<i32>} : memref<8x32xf32, #tpu.memory_space<vmem>>, vector<1x32xf32>,
    %c1_i32 = arith.constant 1 : i32
    %8 = arith.addi %0, %c1_i32 : i32
    %9 = arith.index_cast %8 : i32 to index
    %10 = memref.load %arg1[%9] : memref<8xi32, #tpu.memory_space<smem>>
    %11 = arith.index_cast %10 : i32 to index
    %c0_1 = arith.constant 0 : index
    %12 = vector.load %arg3[%11, %c0_1] : memref<10x32xf32, #tpu.memory_space<vmem>>, vector<1x32xf32>
    %13 = arith.index_cast %c1_i32 : i32 to index
    %c0_2 = arith.constant 0 : index
    %14 = vector.load %arg5[%13, %c0_2] : memref<8x32xf32, #tpu.memory_space<vmem>>, vector<1x32xf32>
    tpu.vector_store %arg5[%13, %c0_2], %12 {strides = array<i32>} : memref<8x32xf32, #tpu.memory_space<vmem>>, vector<1x32xf32>,
    %c2_i32 = arith.constant 2 : i32
    %15 = arith.addi %0, %c2_i32 : i32
    %16 = arith.index_cast %15 : i32 to index
    %17 = memref.load %arg1[%16] : memref<8xi32, #tpu.memory_space<smem>>
    %18 = arith.index_cast %17 : i32 to index
    %c0_3 = arith.constant 0 : index
    %19 = vector.load %arg3[%18, %c0_3] : memref<10x32xf32, #tpu.memory_space<vmem>>, vector<1x32xf32>
    %20 = arith.index_cast %c2_i32 : i32 to index
    %c0_4 = arith.constant 0 : index
    %21 = vector.load %arg5[%20, %c0_4] : memref<8x32xf32, #tpu.memory_space<vmem>>, vector<1x32xf32>
    tpu.vector_store %arg5[%20, %c0_4], %19 {strides = array<i32>} : memref<8x32xf32, #tpu.memory_space<vmem>>, vector<1x32xf32>,
    %c3_i32 = arith.constant 3 : i32
    %22 = arith.addi %0, %c3_i32 : i32
    %23 = arith.index_cast %22 : i32 to index
    %24 = memref.load %arg1[%23] : memref<8xi32, #tpu.memory_space<smem>>
    %25 = arith.index_cast %24 : i32 to index
    %c0_5 = arith.constant 0 : index
    %26 = vector.load %arg3[%25, %c0_5] : memref<10x32xf32, #tpu.memory_space<vmem>>, vector<1x32xf32>
    %27 = arith.index_cast %c3_i32 : i32 to index
    %c0_6 = arith.constant 0 : index
    %28 = vector.load %arg5[%27, %c0_6] : memref<8x32xf32, #tpu.memory_space<vmem>>, vector<1x32xf32>
    tpu.vector_store %arg5[%27, %c0_6], %26 {strides = array<i32>} : memref<8x32xf32, #tpu.memory_space<vmem>>, vector<1x32xf32>,
    %c4_i32 = arith.constant 4 : i32
    %29 = arith.addi %0, %c4_i32 : i32
    %30 = arith.index_cast %29 : i32 to index
    %31 = memref.load %arg1[%30] : memref<8xi32, #tpu.memory_space<smem>>
    %32 = arith.index_cast %31 : i32 to index
    %c0_7 = arith.constant 0 : index
    %33 = vector.load %arg3[%32, %c0_7] : memref<10x32xf32, #tpu.memory_space<vmem>>, vector<1x32xf32>
    %34 = arith.index_cast %c4_i32 : i32 to index
    %c0_8 = arith.constant 0 : index
    %35 = vector.load %arg5[%34, %c0_8] : memref<8x32xf32, #tpu.memory_space<vmem>>, vector<1x32xf32>
    tpu.vector_store %arg5[%34, %c0_8], %33 {strides = array<i32>} : memref<8x32xf32, #tpu.memory_space<vmem>>, vector<1x32xf32>,
    %c5_i32 = arith.constant 5 : i32
    %36 = arith.addi %0, %c5_i32 : i32
    %37 = arith.index_cast %36 : i32 to index
    %38 = memref.load %arg1[%37] : memref<8xi32, #tpu.memory_space<smem>>
    %39 = arith.index_cast %38 : i32 to index
    %c0_9 = arith.constant 0 : index
    %40 = vector.load %arg3[%39, %c0_9] : memref<10x32xf32, #tpu.memory_space<vmem>>, vector<1x32xf32>
    %41 = arith.index_cast %c5_i32 : i32 to index
    %c0_10 = arith.constant 0 : index
    %42 = vector.load %arg5[%41, %c0_10] : memref<8x32xf32, #tpu.memory_space<vmem>>, vector<1x32xf32>
    tpu.vector_store %arg5[%41, %c0_10], %40 {strides = array<i32>} : memref<8x32xf32, #tpu.memory_space<vmem>>, vector<1x32xf32>,
    %c6_i32 = arith.constant 6 : i32
    %43 = arith.addi %0, %c6_i32 : i32
    %44 = arith.index_cast %43 : i32 to index
    %45 = memref.load %arg1[%44] : memref<8xi32, #tpu.memory_space<smem>>
    %46 = arith.index_cast %45 : i32 to index
    %c0_11 = arith.constant 0 : index
    %47 = vector.load %arg3[%46, %c0_11] : memref<10x32xf32, #tpu.memory_space<vmem>>, vector<1x32xf32>
    %48 = arith.index_cast %c6_i32 : i32 to index
    %c0_12 = arith.constant 0 : index
    %49 = vector.load %arg5[%48, %c0_12] : memref<8x32xf32, #tpu.memory_space<vmem>>, vector<1x32xf32>
    tpu.vector_store %arg5[%48, %c0_12], %47 {strides = array<i32>} : memref<8x32xf32, #tpu.memory_space<vmem>>, vector<1x32xf32>,
    %c7_i32 = arith.constant 7 : i32
    %50 = arith.addi %0, %c7_i32 : i32
    %51 = arith.index_cast %50 : i32 to index
    %52 = memref.load %arg1[%51] : memref<8xi32, #tpu.memory_space<smem>>
    %53 = arith.index_cast %52 : i32 to index
    %c0_13 = arith.constant 0 : index
    %54 = vector.load %arg3[%53, %c0_13] : memref<10x32xf32, #tpu.memory_space<vmem>>, vector<1x32xf32>
    %55 = arith.index_cast %c7_i32 : i32 to index
    %c0_14 = arith.constant 0 : index
    %56 = vector.load %arg5[%55, %c0_14] : memref<8x32xf32, #tpu.memory_space<vmem>>, vector<1x32xf32>
    tpu.vector_store %arg5[%55, %c0_14], %54 {strides = array<i32>} : memref<8x32xf32, #tpu.memory_space<vmem>>, vector<1x32xf32>,
    %c8_i32_15 = arith.constant 8 : i32
    %c0_16 = arith.constant 0 : index
    %c0_17 = arith.constant 0 : index
    %57 = vector.load %arg2[%c0_16, %c0_17] : memref<8x32xf32, #tpu.memory_space<vmem>>, vector<8x32xf32>
    %c0_18 = arith.constant 0 : index
    %c0_19 = arith.constant 0 : index
    %58 = vector.load %arg5[%c0_18, %c0_19] : memref<8x32xf32, #tpu.memory_space<vmem>>, vector<8x32xf32>
    %59 = arith.subf %57, %58 : vector<8x32xf32>
    %60 = arith.mulf %59, %59 : vector<8x32xf32>
    %cst = arith.constant dense<0.000000e+00> : vector<8xf32>
    %61 = vector.multi_reduction <add>, %60, %cst [1] : vector<8x32xf32> to vector<8xf32>
    %62 = vector.shape_cast %61 : vector<8xf32> to vector<8x1xf32>
    %cst_20 = arith.constant 9.99999996E-13 : f32
    %cst_21 = arith.constant 9.99999995E+11 : f32
    %63 = vector.broadcast %cst_20 : f32 to vector<8x1xf32>
    %64 = arith.maximumf %63, %62 : vector<8x1xf32>
    %65 = vector.broadcast %cst_21 : f32 to vector<8x1xf32>
    %66 = arith.minimumf %65, %64 : vector<8x1xf32>
    %67 = tpu.iota {dimensions = array<i32: 0>} : vector<8x1xi32>
    %68 = vector.broadcast %0 : i32 to vector<8x1xi32>
    %69 = arith.addi %68, %67 : vector<8x1xi32>
    %c8_i32_22 = arith.constant 8 : i32
    %70 = vector.broadcast %c8_i32_22 : i32 to vector<8x1xi32>
    %71 = arith.cmpi slt, %69, %70 : vector<8x1xi32>
    %cst_23 = arith.constant 0.000000e+00 : f32
    %72 = vector.broadcast %cst_23 : f32 to vector<8x1xf32>
    %73 = arith.select %71, %66, %72 : vector<8x1xi1>, vector<8x1xf32>
    %74 = vector.shape_cast %73 : vector<8x1xf32> to vector<1x8x1xf32>
    %cst_24 = arith.constant dense<0.000000e+00> : vector<1xf32>
    %75 = vector.multi_reduction <add>, %74, %cst_24 [1, 2] : vector<1x8x1xf32> to vector<1xf32>
    %76 = vector.shape_cast %75 : vector<1xf32> to vector<1x1x1xf32>
    %77 = vector.extract %76[0, 0, 0] : f32 from vector<1x1x1xf32>
    %78 = vector.broadcast %77 : f32 to vector<1x8x128xf32>
    %c0_25 = arith.constant 0 : index
    %c0_26 = arith.constant 0 : index
    %c0_27 = arith.constant 0 : index
    %79 = vector.load %arg4[%c0_25, %c0_26, %c0_27] : memref<1x8x128xf32, #tpu.memory_space<vmem>>, vector<1x8x128xf32>
    tpu.vector_store %arg4[%c0_25, %c0_26, %c0_27], %78 {strides = array<i32>} : memref<1x8x128xf32, #tpu.memory_space<vmem>>, vector<1x8x128xf32>,
    return
  }
  func.func @transform_0(%arg0: i32, %arg1: memref<8xi32, #tpu.memory_space<smem>>) -> (i32, i32) {
    %c0_i32 = arith.constant 0 : i32
    %c0_i32_0 = arith.constant 0 : i32
    return %arg0, %c0_i32 : i32, i32
  }
  func.func @transform_1(%arg0: i32, %arg1: memref<8xi32, #tpu.memory_space<smem>>) -> (i32, i32) {
    %c0_i32 = arith.constant 0 : i32
    %c0_i32_0 = arith.constant 0 : i32
    %c0_i32_1 = arith.constant 0 : i32
    return %c0_i32, %c0_i32_0 : i32, i32
  }
  func.func @transform_2(%arg0: i32, %arg1: memref<8xi32, #tpu.memory_space<smem>>) -> (i32, i32, i32) {
    %c0_i32 = arith.constant 0 : i32
    %c0_i32_0 = arith.constant 0 : i32
    %c0_i32_1 = arith.constant 0 : i32
    return %arg0, %c0_i32, %c0_i32_0 : i32, i32, i32
  }
}

</mosaic_0001>

<bundles_post_ra>
// kernel: tpu_custom_call.1
= control target key start
LH: loop header
LB: loop body
LE: loop exit
PB: predicated region body
PF: predicated region fallthrough
CT: control target
= control target key end

     0   :  { %s325_s0 = inlined_call_operand.hbm [shape: s32[8], index: 0, kind: input, shape index: {}]   ;;  %s326_s1 = inlined_call_operand.hbm [shape: f32[8,32], index: 1, kind: input, shape index: {}]   ;;  %s327_s2 = inlined_call_operand.hbm [shape: f32[10,32], index: 2, kind: input, shape index: {}]   ;;  %s328_s3 = inlined_call_operand.hbm [shape: f32[1,8,128], index: 3, kind: output, shape index: {}]  }
   0x1   :  { %s152_s14 = scalar_lea.hbm %s325_s0, 16 }
   0x2   :  { %p153_p0 = scmp.ne.s32.totalorder %s325_s0, %s152_s14  ;;  %p156_p1 = scmp.lt.u32.totalorder %s152_s14, %s325_s0 }
   0x4   :  { %p158_p2 = pnand %p156_p1, %p153_p0 }
   0x6   :  { %161 = shalt.err (!%p158_p2)  }
   0x7   :  { %s236_s19 = smov [#allocation4]  }
   0x8   :  { %9 = dma.hbm_to_smem %s325_s0, 16, %s236_s19, [#allocation3] }
   0x9   :  { %228 = dma.done.wait [#allocation3], 16 }
   0xa   :  { %229 = vsyncadd [#allocation3], 4294967280 }
   0xb   :  { %11 = sfence }
   0xc   :  { %12 = vsyncpa [#allocation6], 0 }
   0xd   :  { %13 = vsyncpa [#allocation9], 0 }
   0xe   :  { %14 = vsyncpa [#allocation7], 0  ;;  %s237_s22 = smov [#allocation5]   ;;  %s238_s24 = smov [#allocation8]  }
   0xf   :  { %s21_s23 = sshll.u32 %s237_s22, 4  ;;  %s30_s25 = sshll.u32 %s238_s24, 4  ;;  %s22_s23 = int_to_ptr.vmem [resolvable:$true] %s21_s23  ;;  %s274_s25 = int_to_ptr.vmem [resolvable:$true] %s30_s25 }
  0x10   :  { %s162_s28 = scalar_lea.hbm %s326_s1, 128 }
  0x11   :  { %p163_p3 = scmp.ne.s32.totalorder %s326_s1, %s162_s28  ;;  %p166_p4 = scmp.lt.u32.totalorder %s162_s28, %s326_s1 }
  0x13   :  { %p168_p5 = pnand %p166_p4, %p163_p3 }
  0x15   :  { %171 = shalt.err (!%p168_p5)
}
  0x16   :  { %s172_s5 = scalar_lea.vmem %s22_s23, 128  ;;  %p177_p7 = scmp.lt.s32.totalorder %s22_s23, %s22_s23 }
  0x17   :  { %p173_p6 = scmp.ne.s32.totalorder %s22_s23, %s172_s5  ;;  %p178_p8 = scmp.lt.s32.totalorder %s172_s5, %s172_s5 }
  0x19   :  { %p179_p9 = por %p178_p8, %p177_p7 }
  0x1b   :  { %p180_p10 = pnand %p179_p9, %p173_p6 }
  0x1d   :  { %183 = shalt.err (!%p180_p10)
}
  0x1e   :  { %24 = dma.hbm_to_vmem [thread:$0]  %s326_s1, 128, %s22_s23, [#allocation6]  }
  0x1f   :  { %s184_s10 = scalar_lea.hbm %s327_s2, 256 }
  0x20   :  { %p185_p11 = scmp.ne.s32.totalorder %s327_s2, %s184_s10  ;;  %p188_p12 = scmp.lt.u32.totalorder %s184_s10, %s327_s2 }
  0x22   :  { %p190_p13 = pnand %p188_p12, %p185_p11 }
  0x24   :  { %193 = shalt.err (!%p190_p13)
}
  0x25   :  { %s194_s15 = scalar_lea.vmem %s274_s25, 256  ;;  %p199_p1 = scmp.lt.s32.totalorder %s274_s25, %s274_s25 }
  0x26   :  { %p195_p0 = scmp.ne.s32.totalorder %s274_s25, %s194_s15  ;;  %p200_p2 = scmp.lt.s32.totalorder %s194_s15, %s194_s15 }
  0x28   :  { %p201_p3 = por %p200_p2, %p199_p1 }
  0x2a   :  { %p202_p4 = pnand %p201_p3, %p195_p0 }
  0x2c   :  { %205 = shalt.err (!%p202_p4)
}
  0x2d   :  { %s239_s1 = smov 128   ;;  %s240_s16 = smov 8  }
  0x2e   :  { %36 = dma.hbm_to_vmem [thread:$0]  %s327_s2, 256, %s274_s25, [#allocation9], %s239_s1, %s239_s1, %s240_s16  }
  0x2f   :  { %230 = dma.done.wait [#allocation6], 128  }
  0x30   :  { %231 = vsyncadd [#allocation6], 4294967168 }
  0x31   :  { %232 = dma.done.wait [#allocation9], 256  }
  0x32   :  { %233 = vsyncadd [#allocation9], 4294967040  ;;  %s44_s19 = sld [smem:[#allocation4]]  ;;  %s137_s20 = sld [smem:[#allocation4 + $0x1]]  ;;  %vm47_vm0 = vcmask 253952   ;;  %v84_v8 = vld [vmem:[#allocation5] sm:$0xff] }
  0x33   :  { %s138_s21 = sld [smem:[#allocation4 + $0x2]]  ;;  %s139_s22 = sld [smem:[#allocation4 + $0x3]]  ;;  %vm88_vm1 = vcmask 261120   ;;  %vm100_vm2 = vcmask 7168  }
  0x34   :  { %s140_s23 = sld [smem:[#allocation4 + $0x4]]  ;;  %s141_s24 = sld [smem:[#allocation4 + $0x5]] }
  0x35   :  { %s142_s26 = sld [smem:[#allocation4 + $0x6]]  ;;  %s143_s27 = sld [smem:[#allocation4 + $0x7]] }
  0x36   :  { %s241_s6 = smov [#allocation10]  }
  0x37   :  { %s119_s7 = sshll.u32 %s241_s6, 4  ;;  %s120_s7 = int_to_ptr.vmem [resolvable:$true] %s119_s7 }
  0x38   :  { %s45_s28 = scalar_lea.vmem [#allocation8], %s44_s19  ;;  %s51_s29 = scalar_lea.vmem [#allocation8], %s137_s20 }
  0x39   :  { %v46_v0 = vld [vmem:[%s45_s28] sm:$0x1]  ;;  %s56_s2 = scalar_lea.vmem [#allocation8], %s138_s21  ;;  %s61_s25 = scalar_lea.vmem [#allocation8], %s139_s22 }
  0x3a   :  { %v52_v1 = vld [vmem:[%s51_s29] sm:$0x1]  ;;  %48 = vst.msk [vmem:[#allocation2] sm:$0x1] %vm47_vm0, %v46_v0  ;;  %s66_s30 = scalar_lea.vmem [#allocation8], %s140_s23  ;;  %s71_s0 = scalar_lea.vmem [#allocation8], %s141_s24 }
  0x3b   :  { %53 = vst.msk [vmem:[#allocation2 + $0x1] sm:$0x1] %vm47_vm0, %v52_v1  ;;  %v57_v2 = vld [vmem:[%s56_s2] sm:$0x1]  ;;  %s76_s4 = scalar_lea.vmem [#allocation8], %s142_s26  ;;  %s81_s5 = scalar_lea.vmem [#allocation8], %s143_s27 }
  0x3c   :  { %v62_v3 = vld [vmem:[%s61_s25] sm:$0x1]  ;;  %58 = vst.msk [vmem:[#allocation2 + $0x2] sm:$0x1] %vm47_vm0, %v57_v2  ;;  %s206_s9 = scalar_lea.vmem %s120_s7, 128  ;;  %p211_p6 = scmp.lt.s32.totalorder %s120_s7, %s120_s7 }
  0x3d   :  { %63 = vst.msk [vmem:[#allocation2 + $0x3] sm:$0x1] %vm47_vm0, %v62_v3  ;;  %v67_v4 = vld [vmem:[%s66_s30] sm:$0x1]  ;;  %p207_p5 = scmp.ne.s32.totalorder %s120_s7, %s206_s9  ;;  %p212_p7 = scmp.lt.s32.totalorder %s206_s9, %s206_s9 }
  0x3e   :  { %v72_v5 = vld [vmem:[%s71_s0] sm:$0x1]  ;;  %68 = vst.msk [vmem:[#allocation2 + $0x4] sm:$0x1] %vm47_vm0, %v67_v4 }
  0x3f   :  { %73 = vst.msk [vmem:[#allocation2 + $0x5] sm:$0x1] %vm47_vm0, %v72_v5  ;;  %v77_v6 = vld [vmem:[%s76_s4] sm:$0x1]  ;;  %p213_p8 = por %p212_p7, %p211_p6 }
  0x40   :  { %v82_v7 = vld [vmem:[%s81_s5] sm:$0x1]  ;;  %78 = vst.msk [vmem:[#allocation2 + $0x6] sm:$0x1] %vm47_vm0, %v77_v6 }
  0x41   :  { %83 = vst.msk [vmem:[#allocation2 + $0x7] sm:$0x1] %vm47_vm0, %v82_v7  ;;  %p214_p9 = pnand %p213_p8, %p207_p5 }
  0x48   :  { %v85_v9 = vld [vmem:[#allocation2] sm:$0xff] }
  0x49   :  { %v86_v10 = vsub.f32 %v84_v8, %v85_v9 }
  0x4b   :  { %v87_v11 = vmul.f32 %v86_v10, %v86_v10 }
  0x4d   :  { %v89_v12 = vsel %vm88_vm1, %v87_v11, 0.0 }
  0x4e   :  { %90 = vadd.xlane.f32.xlu0 %v89_v12 }
  0xdb   :  { %v91_v13 = vpop.xlane.xlu0 %90 }
  0xdc   :  { %v92_v14 = vmax.f32 %v91_v13, 1e-12 }
  0xde   :  { %v93_v15 = vmin.f32 %v92_v14, 1e+12 }
  0xe0   :  { %v101_v16 = vsel %vm100_vm2, %v93_v15, 0.0 }
  0xe1   :  { %102 = vadd.xlane.f32.xlu0 %v101_v16 }
 0x16e   :  { %v103_v17 = vpop.xlane.xlu0 %102 }
 0x16f   :  { %v104_v18 = vrot.slane %v103_v17, 4 }
 0x171   :  { %v105_v19 = vadd.f32 %v104_v18, %v103_v17 }
 0x173   :  { %v106_v20 = vrot.slane %v105_v19, 2 }
 0x175   :  { %v107_v21 = vadd.f32 %v106_v20, %v105_v19 }
 0x177   :  { %v108_v22 = vrot.slane %v107_v21, 1 }
 0x179   :  { %v109_v23 = vadd.f32 %v108_v22, %v107_v21 }
 0x17b   :  { %144 = vpush %v109_v23 }
 0x1ac   :  { %s145_s8 = spop %144 }
 0x1ad   :  { %v111_v24 = vstv %s145_s8 }
 0x1ae   :  { %112 = vst [vmem:[#allocation10] sm:$0xff] %v111_v24 }
 0x1af   :  { %217 = shalt.err (!%p214_p9)
}
 0x1b0   :  { %s218_s12 = scalar_lea.hbm %s328_s3, 128 }
 0x1b1   :  { %p219_p10 = scmp.ne.s32.totalorder %s328_s3, %s218_s12  ;;  %p222_p11 = scmp.lt.u32.totalorder %s218_s12, %s328_s3 }
 0x1b3   :  { %p224_p12 = pnand %p222_p11, %p219_p10 }
 0x1b5   :  { %227 = shalt.err (!%p224_p12)
}
 0x1b6   :  { %122 = dma.vmem_to_hbm [thread:$0]  %s120_s7, 128, %s328_s3, [#allocation7]  }
 0x1b7   :  { %234 = dma.done.wait [#allocation7], 128  }
 0x1b8   :  { %235 = vsyncadd [#allocation7], 4294967168 }
 0x1b9   :  { %126 = vsyncpa [#allocation6], 1 }
 0x1ba   :  { %127 = vsyncpa [#allocation9], 1 }
 0x1bb   :  { %128 = vsyncpa [#allocation7], 1 }

</bundles_post_ra>
